<compile_context>
chip_gen: v5e
topology: v5e:2x2
jax: 0.10.0
libtpu: 0.0.40
codegen_flags: <defaults>
</compile_context>

<pallas_src>
import functools
import math

import jax
import jax.numpy as jnp
import numpy as np
from jax.experimental import pallas as pl
from jax.experimental.pallas import tpu as pltpu


def _self_output_kernel(x_ref, res_ref, w_ref, b_ref, g_ref, beta_ref, out_ref,
                        *, ln_eps):
    # x_ref/res_ref: [TM, H] f32, w_ref: [H, H] bf16, b/g/beta: [1, H] f32.
    x = x_ref[...]

    # Dense: bf16 operands, f32 accumulation on the MXU.
    y = jnp.dot(x.astype(jnp.bfloat16), w_ref[...],
                preferred_element_type=jnp.float32) + b_ref[0]

    # TODO(synk): training-mode dropout (RNG mask via pltpu.prng_*) not implemented;
    # eval-mode dropout is the identity, matching module.eval().

    # Residual add + LayerNorm, all in f32.
    z = y + res_ref[...]
    mean = jnp.mean(z, axis=-1, keepdims=True)
    zc = z - mean
    var = jnp.mean(zc * zc, axis=-1, keepdims=True)
    out_ref[...] = zc * jax.lax.rsqrt(var + ln_eps) * g_ref[0] + beta_ref[0]


def _pick_row_tile(n_rows, max_tm):
    """Largest row tile <= max_tm that divides n_rows and satisfies the (8,128) rule."""
    if n_rows <= max_tm:
        return n_rows
    for tm in range(min(max_tm, n_rows), 7, -1):
        if n_rows % tm == 0 and tm % 8 == 0:
            return tm
    return n_rows


def welkir_self_output(hidden_states, input_tensor, params, *, ln_eps=1e-12,
                       max_row_tile=512):
    """hidden_states, input_tensor: [B, S, H] f32.

    params: {"w": [H, H] (pre-transposed, x @ w), "b": [1, H],
             "ln_g": [1, H], "ln_b": [1, H]}.
    """
    B, S, H = hidden_states.shape
    N = B * S
    x2 = hidden_states.reshape(N, H)
    r2 = input_tensor.reshape(N, H)

    # Cast matmul weights once on the wrapper side; bias / LN params stay f32.
    w16 = params["w"].astype(jnp.bfloat16)

    TM = _pick_row_tile(N, max_row_tile)
    grid = (N // TM,)

    kernel = functools.partial(_self_output_kernel, ln_eps=ln_eps)
    const = lambda shape: pl.BlockSpec(shape, lambda i: (0, 0))

    out2 = pl.pallas_call(
        kernel,
        out_shape=jax.ShapeDtypeStruct((N, H), jnp.float32),
        grid_spec=pltpu.PrefetchScalarGridSpec(
            num_scalar_prefetch=0,
            grid=grid,
            in_specs=[
                pl.BlockSpec((TM, H), lambda i: (i, 0)),   # dense input rows
                pl.BlockSpec((TM, H), lambda i: (i, 0)),   # residual rows
                const((H, H)),                             # W (bf16)
                const((1, H)),                             # b
                const((1, H)),                             # LN gamma
                const((1, H)),                             # LN beta
            ],
            out_specs=pl.BlockSpec((TM, H), lambda i: (i, 0)),
        ),
        compiler_params=pltpu.CompilerParams(
            dimension_semantics=("parallel",),
        ),
    )(x2, r2, w16, params["b"], params["ln_g"], params["ln_b"])

    return out2.reshape(B, S, H)


def _reference(hidden_states, input_tensor, params, *, ln_eps=1e-12):
    """Pure-JAX f32 reference mirroring the PyTorch forward (eval mode)."""
    y = hidden_states @ params["w"] + params["b"][0]
    z = y + input_tensor
    mean = jnp.mean(z, -1, keepdims=True)
    var = jnp.mean((z - mean) ** 2, -1, keepdims=True)
    return (z - mean) / jnp.sqrt(var + ln_eps) * params["ln_g"][0] + params["ln_b"][0]


if __name__ == "__main__":
    B, S, H = 2, 8, 32
    ln_eps = 1e-12

    key = jax.random.PRNGKey(0)
    ks = jax.random.split(key, 8)

    bound = 1.0 / math.sqrt(H)
    params = {
        # Pre-transposed Linear weight: out = x @ w + b.
        "w": jax.random.uniform(ks[0], (H, H), jnp.float32, -bound, bound),
        "b": jax.random.uniform(ks[1], (1, H), jnp.float32, -bound, bound),
        "ln_g": 1.0 + 0.1 * jax.random.normal(ks[2], (1, H), jnp.float32),
        "ln_b": 0.1 * jax.random.normal(ks[3], (1, H), jnp.float32),
    }

    hidden_states = jax.random.normal(ks[4], (B, S, H), jnp.float32)
    input_tensor = jax.random.normal(ks[5], (B, S, H), jnp.float32)

    out = welkir_self_output(hidden_states, input_tensor, params, ln_eps=ln_eps)
    out = jax.block_until_ready(out)

    ref = _reference(hidden_states, input_tensor, params, ln_eps=ln_eps)
    # Tolerance accounts for bf16 matmul operands (f32 accumulation) in the kernel.
    np.testing.assert_allclose(np.asarray(out), np.asarray(ref),
                               rtol=2e-2, atol=2e-2)

    print("KERNEL_OK")
</pallas_src>

<mosaic_0001>
module attributes {stable_mosaic.version = 11 : i64} {
  func.func @_self_output_kernel(%arg0: i32, %arg1: memref<16x32xf32, #tpu.memory_space<vmem>>, %arg2: memref<16x32xf32, #tpu.memory_space<vmem>>, %arg3: memref<32x32xbf16, #tpu.memory_space<vmem>>, %arg4: memref<1x32xf32, #tpu.memory_space<vmem>>, %arg5: memref<1x32xf32, #tpu.memory_space<vmem>>, %arg6: memref<1x32xf32, #tpu.memory_space<vmem>>, %arg7: memref<16x32xf32, #tpu.memory_space<vmem>>) attributes {dimension_semantics = [#tpu.dimension_semantics<parallel>], iteration_bounds = array<i64: 1>, scalar_prefetch = 0 : i64, scratch_operands = 0 : i64, tpu.core_type = #tpu.core_type<tc>, window_params = [{transform_indices = @transform_0, window_bounds = array<i64: 16, 32>}, {transform_indices = @transform_1, window_bounds = array<i64: 16, 32>}, {pipeline_mode = #tpu.pipeline_mode<synchronous>, transform_indices = @transform_2, window_bounds = array<i64: 32, 32>}, {pipeline_mode = #tpu.pipeline_mode<synchronous>, transform_indices = @transform_3, window_bounds = array<i64: 1, 32>}, {pipeline_mode = #tpu.pipeline_mode<synchronous>, transform_indices = @transform_4, window_bounds = array<i64: 1, 32>}, {pipeline_mode = #tpu.pipeline_mode<synchronous>, transform_indices = @transform_5, window_bounds = array<i64: 1, 32>}, {transform_indices = @transform_6, window_bounds = array<i64: 16, 32>}]} {
    %c0 = arith.constant 0 : index
    %c0_0 = arith.constant 0 : index
    %0 = vector.load %arg1[%c0, %c0_0] : memref<16x32xf32, #tpu.memory_space<vmem>>, vector<16x32xf32>
    %1 = arith.truncf %0 : vector<16x32xf32> to vector<16x32xbf16>
    %c0_1 = arith.constant 0 : index
    %c0_2 = arith.constant 0 : index
    %2 = vector.load %arg3[%c0_1, %c0_2] : memref<32x32xbf16, #tpu.memory_space<vmem>>, vector<32x32xbf16>
    %cst = arith.constant dense<0.000000e+00> : vector<16x32xf32>
    %3 = tpu.matmul %1, %2, %cst {dimension_numbers = #tpu.dot_dimension_numbers<[1], [0], [0], [1], [0, 0, 1, 1], [], []>} : vector<16x32xbf16>, vector<32x32xbf16>, vector<16x32xf32> -> vector<16x32xf32>
    %c0_3 = arith.constant 0 : index
    %c0_4 = arith.constant 0 : index
    %4 = vector.load %arg4[%c0_3, %c0_4] : memref<1x32xf32, #tpu.memory_space<vmem>>, vector<1x32xf32>
    %5 = vector.shape_cast %4 : vector<1x32xf32> to vector<32xf32>
    %6 = vector.shape_cast %5 : vector<32xf32> to vector<1x32xf32>
    %7 = vector.broadcast %6 : vector<1x32xf32> to vector<16x32xf32>
    %8 = arith.addf %3, %7 : vector<16x32xf32>
    %c0_5 = arith.constant 0 : index
    %c0_6 = arith.constant 0 : index
    %9 = vector.load %arg2[%c0_5, %c0_6] : memref<16x32xf32, #tpu.memory_space<vmem>>, vector<16x32xf32>
    %10 = arith.addf %8, %9 : vector<16x32xf32>
    %cst_7 = arith.constant dense<0.000000e+00> : vector<16xf32>
    %11 = vector.multi_reduction <add>, %10, %cst_7 [1] : vector<16x32xf32> to vector<16xf32>
    %12 = vector.shape_cast %11 : vector<16xf32> to vector<16x1xf32>
    %cst_8 = arith.constant 3.200000e+01 : f32
    %13 = vector.broadcast %cst_8 : f32 to vector<16x1xf32>
    %14 = arith.divf %12, %13 : vector<16x1xf32>
    %15 = vector.broadcast %14 : vector<16x1xf32> to vector<16x32xf32>
    %16 = arith.subf %10, %15 : vector<16x32xf32>
    %17 = arith.mulf %16, %16 : vector<16x32xf32>
    %cst_9 = arith.constant dense<0.000000e+00> : vector<16xf32>
    %18 = vector.multi_reduction <add>, %17, %cst_9 [1] : vector<16x32xf32> to vector<16xf32>
    %19 = vector.shape_cast %18 : vector<16xf32> to vector<16x1xf32>
    %cst_10 = arith.constant 3.200000e+01 : f32
    %20 = vector.broadcast %cst_10 : f32 to vector<16x1xf32>
    %21 = arith.divf %19, %20 : vector<16x1xf32>
    %cst_11 = arith.constant 9.99999996E-13 : f32
    %22 = vector.broadcast %cst_11 : f32 to vector<16x1xf32>
    %23 = arith.addf %21, %22 : vector<16x1xf32>
    %24 = math.rsqrt %23 : vector<16x1xf32>
    %25 = vector.broadcast %24 : vector<16x1xf32> to vector<16x32xf32>
    %26 = arith.mulf %16, %25 : vector<16x32xf32>
    %c0_12 = arith.constant 0 : index
    %c0_13 = arith.constant 0 : index
    %27 = vector.load %arg5[%c0_12, %c0_13] : memref<1x32xf32, #tpu.memory_space<vmem>>, vector<1x32xf32>
    %28 = vector.shape_cast %27 : vector<1x32xf32> to vector<32xf32>
    %29 = vector.shape_cast %28 : vector<32xf32> to vector<1x32xf32>
    %30 = vector.broadcast %29 : vector<1x32xf32> to vector<16x32xf32>
    %31 = arith.mulf %26, %30 : vector<16x32xf32>
    %c0_14 = arith.constant 0 : index
    %c0_15 = arith.constant 0 : index
    %32 = vector.load %arg6[%c0_14, %c0_15] : memref<1x32xf32, #tpu.memory_space<vmem>>, vector<1x32xf32>
    %33 = vector.shape_cast %32 : vector<1x32xf32> to vector<32xf32>
    %34 = vector.shape_cast %33 : vector<32xf32> to vector<1x32xf32>
    %35 = vector.broadcast %34 : vector<1x32xf32> to vector<16x32xf32>
    %36 = arith.addf %31, %35 : vector<16x32xf32>
    %c0_16 = arith.constant 0 : index
    %c0_17 = arith.constant 0 : index
    %37 = vector.load %arg7[%c0_16, %c0_17] : memref<16x32xf32, #tpu.memory_space<vmem>>, vector<16x32xf32>
    tpu.vector_store %arg7[%c0_16, %c0_17], %36 {strides = array<i32>} : memref<16x32xf32, #tpu.memory_space<vmem>>, vector<16x32xf32>,
    return
  }
  func.func @transform_0(%arg0: i32) -> (i32, i32) {
    %c0_i32 = arith.constant 0 : i32
    %c0_i32_0 = arith.constant 0 : i32
    return %arg0, %c0_i32 : i32, i32
  }
  func.func @transform_1(%arg0: i32) -> (i32, i32) {
    %c0_i32 = arith.constant 0 : i32
    %c0_i32_0 = arith.constant 0 : i32
    return %arg0, %c0_i32 : i32, i32
  }
  func.func @transform_2(%arg0: i32) -> (i32, i32) {
    %c0_i32 = arith.constant 0 : i32
    %c0_i32_0 = arith.constant 0 : i32
    %c0_i32_1 = arith.constant 0 : i32
    return %c0_i32, %c0_i32_0 : i32, i32
  }
  func.func @transform_3(%arg0: i32) -> (i32, i32) {
    %c0_i32 = arith.constant 0 : i32
    %c0_i32_0 = arith.constant 0 : i32
    %c0_i32_1 = arith.constant 0 : i32
    return %c0_i32, %c0_i32_0 : i32, i32
  }
  func.func @transform_4(%arg0: i32) -> (i32, i32) {
    %c0_i32 = arith.constant 0 : i32
    %c0_i32_0 = arith.constant 0 : i32
    %c0_i32_1 = arith.constant 0 : i32
    return %c0_i32, %c0_i32_0 : i32, i32
  }
  func.func @transform_5(%arg0: i32) -> (i32, i32) {
    %c0_i32 = arith.constant 0 : i32
    %c0_i32_0 = arith.constant 0 : i32
    %c0_i32_1 = arith.constant 0 : i32
    return %c0_i32, %c0_i32_0 : i32, i32
  }
  func.func @transform_6(%arg0: i32) -> (i32, i32) {
    %c0_i32 = arith.constant 0 : i32
    %c0_i32_0 = arith.constant 0 : i32
    return %arg0, %c0_i32 : i32, i32
  }
}

</mosaic_0001>

<bundles_post_ra>
// kernel: tpu_custom_call.1
= control target key start
LH: loop header
LB: loop body
LE: loop exit
PB: predicated region body
PF: predicated region fallthrough
CT: control target
= control target key end

     0   :  { %11 = vsyncpa [#allocation3], 0  ;;  %s414_s0 = inlined_call_operand.hbm [shape: f32[16,32], index: 0, kind: input, shape index: {}]   ;;  %s415_s1 = inlined_call_operand.hbm [shape: f32[16,32], index: 1, kind: input, shape index: {}]   ;;  %s416_s2 = inlined_call_operand.hbm [shape: bf16[32,32], index: 2, kind: input, shape index: {}]   ;;  %s417_s3 = inlined_call_operand.vmem [shape: f32[1,32], index: 3, kind: input, shape index: {}]   ;;  %s418_s4 = inlined_call_operand.vmem [shape: f32[1,32], index: 4, kind: input, shape index: {}]   ;;  %s419_s5 = inlined_call_operand.vmem [shape: f32[1,32], index: 5, kind: input, shape index: {}]   ;;  %s420_s6 = inlined_call_operand.hbm [shape: f32[16,32], index: 6, kind: output, shape index: {}]  }
   0x1   :  { %12 = vsyncpa [#allocation6], 0 }
   0x2   :  { %13 = vsyncpa [#allocation4], 0  ;;  %s31_s23 = sshll.u32 %s415_s1, 4  ;;  %s333_s24 = smov [#allocation5]   ;;  %s32_s23 = int_to_ptr.hbm [resolvable:$true] %s31_s23 }
   0x3   :  { %s33_s25 = sshll.u32 %s333_s24, 4  ;;  %s18_s28 = sshll.u32 %s414_s0, 4  ;;  %s34_s25 = int_to_ptr.vmem [resolvable:$true] %s33_s25  ;;  %s19_s28 = int_to_ptr.hbm [resolvable:$true] %s18_s28 }
   0x4   :  { %s334_s29 = smov 128   ;;  %s335_s30 = smov 8  }
   0x5   :  { %39 = dma.hbm_to_vmem [thread:$0]  %s32_s23, 256, %s34_s25, [#allocation6], %s334_s29, %s334_s29, %s335_s30  }
   0x6   :  { %s336_s7 = smov [#allocation2]   ;;  %s44_s1 = sshll.u32 %s416_s2, 4  ;;  %s45_s1 = int_to_ptr.hbm [resolvable:$true] %s44_s1 }
   0x7   :  { %s20_s8 = sshll.u32 %s336_s7, 4  ;;  %s337_s0 = smov [#allocation7]   ;;  %s21_s8 = int_to_ptr.vmem [resolvable:$true] %s20_s8 }
   0x8   :  { %26 = dma.hbm_to_vmem [thread:$0]  %s19_s28, 256, %s21_s8, [#allocation3], %s334_s29, %s334_s29, %s335_s30  }
   0x9   :  { %s46_s11 = sshll.u32 %s337_s0, 4  ;;  %s338_s12 = smov 64   ;;  %s47_s11 = int_to_ptr.vmem [resolvable:$true] %s46_s11 }
   0xa   :  { %s339_s13 = smov 4  }
   0xb   :  { %52 = dma.hbm_to_vmem [thread:$0]  %s45_s1, 256, %s47_s11, [#allocation6], %s338_s12, %s338_s12, %s339_s13  }
   0xc   :  { %327 = dma.done.wait [#allocation3], 256  }
   0xd   :  { %328 = vsyncadd [#allocation3], 4294967040 }
   0xe   :  { %329 = dma.done.wait [#allocation6], 512  }
   0xf   :  { %330 = vsyncadd [#allocation6], 4294966784  ;;  %v212_v0 = vld [vmem:[#allocation7 + $0x8] sm:$0xff]  ;;  %v211_v1 = vld [vmem:[#allocation7] sm:$0xff]  ;;  %vm95_vm0 = vcmask 261120   ;;  %v340_v16 = vmov 32.0  }
  0x10   :  { %v72_v2 = vld [vmem:[#allocation2] sm:$0xff]  ;;  %105 = vmatpush.bf16.msra.mxu0 %v212_v0  ;;  %v73_v3 = vld [vmem:[#allocation2 + $0x8] sm:$0xff]  ;;  %v113_v7 = vld [vmem:[#allocation5] sm:$0xff]  ;;  %225 = vrcp.f32 %v340_v16  ;;  %s188_s21 = sshll.u32 %s420_s6, 4  ;;  %s189_s21 = int_to_ptr.hbm [resolvable:$true] %s188_s21 }
  0x11   :  { %v74_v4 = vpack.c.bf16 %v73_v3, %v72_v2  ;;  %v222_v5 = vld [vmem:[%s417_s3] ss:$0 sm:$0xff]  ;;  %v114_v12 = vld [vmem:[#allocation5 + $0x8] sm:$0xff] }
  0x12   :  { %v223_v47 = vld [vmem:[%s418_s4] ss:$0 sm:$0xff]  ;;  %s341_s4 = smov [#allocation8]  }
  0x13   :  { %v224_v51 = vld [vmem:[%s419_s5] ss:$0 sm:$0xff]  ;;  %s186_s18 = sshll.u32 %s341_s4, 4  ;;  %s187_s18 = int_to_ptr.vmem [resolvable:$true] %s186_s18 }
  0x14   :  { %106 = vmatpush.bf16.msra.mxu0 %v211_v1 }
  0x16   :  { %v226_v17 = vpop.eup %225 }
  0x17   :  { %210 = vmatmul.msk.bf16.vlgmr.msra.gmra.mxu0 %vm95_vm0, %v74_v4  ;;  %v124_v18 = vmul.f32 32.0, %v226_v17  ;;  %vm128_vm1 = vweird.f32 %v226_v17 }
  0x19   :  { %v125_v19 = vsub.f32 1.0, %v124_v18 }
  0x1b   :  { %v126_v20 = vmul.f32 %v226_v17, %v125_v19 }
  0x1d   :  { %v127_v21 = vadd.f32 %v226_v17, %v126_v20 }
  0x1f   :  { %v129_v22 = vsel %vm128_vm1, %v226_v17, %v127_v21 }
  0x94   :  { %v108_v6 = vpop.f32.mrf.mxu0 }
  0x95   :  { %v109_v8 = vadd.f32 %v222_v5, %v108_v6 }
  0x97   :  { %v115_v9 = vadd.f32 %v113_v7, %v109_v8 }
  0x99   :  { %v117_v10 = vsel %vm95_vm0, %v115_v9, 0.0 }
  0x9a   :  { %118 = vadd.xlane.f32.xlu0 %v117_v10 }
  0x9c   :  { %v110_v11 = vpop.f32.mrf.mxu0 }
  0x9d   :  { %v111_v13 = vadd.f32 %v222_v5, %v110_v11 }
  0x9f   :  { %v116_v14 = vadd.f32 %v114_v12, %v111_v13 }
  0xa1   :  { %v120_v15 = vsel %vm95_vm0, %v116_v14, 0.0 }
  0xa2   :  { %121 = vadd.xlane.f32.xlu0 %v120_v15 }
 0x10d   :  { %v119_v23 = vpop.xlane.xlu0 %118 }
 0x10e   :  { %v130_v24 = vmul.f32 %v129_v22, %v119_v23 }
 0x110   :  { %v132_v25 = vsub.f32 %v115_v9, %v130_v24 }
 0x112   :  { %v134_v26 = vmul.f32 %v132_v25, %v132_v25 }
 0x114   :  { %v136_v27 = vsel %vm95_vm0, %v134_v26, 0.0 }
 0x115   :  { %137 = vadd.xlane.f32.xlu1 %v136_v27  ;;  %v122_v28 = vpop.xlane.xlu0 %121 }
 0x116   :  { %v131_v29 = vmul.f32 %v129_v22, %v122_v28 }
 0x118   :  { %v133_v30 = vsub.f32 %v116_v14, %v131_v29 }
 0x11a   :  { %v135_v31 = vmul.f32 %v133_v30, %v133_v30 }
 0x11c   :  { %v139_v32 = vsel %vm95_vm0, %v135_v31, 0.0 }
 0x11d   :  { %140 = vadd.xlane.f32.xlu1 %v139_v32 }
 0x188   :  { %v138_v33 = vpop.xlane.xlu1 %137 }
 0x189   :  { %v142_v34 = vmul.f32 %v138_v33, %v129_v22 }
 0x18b   :  { %v144_v35 = vadd.f32 1e-12, %v142_v34 }
 0x18d   :  { %227 = vrsqrt.f32 %v144_v35  ;;  %vm152_vm3 = vweird.f32 %v144_v35 }
 0x190   :  { %v141_v36 = vpop.xlane.xlu1 %140 }
 0x191   :  { %v143_v37 = vmul.f32 %v141_v36, %v129_v22 }
 0x193   :  { %v228_v38 = vpop.eup %227  ;;  %v145_v39 = vadd.f32 1e-12, %v143_v37 }
 0x194   :  { %v147_v40 = vmul.f32 %v228_v38, %v144_v35  ;;  %vm153_vm2 = vweird.f32 %v228_v38 }
 0x195   :  { %229 = vrsqrt.f32 %v145_v39  ;;  %vm154_vm4 = vmor %vm152_vm3, %vm153_vm2  ;;  %vm162_vm6 = vweird.f32 %v145_v39 }
 0x196   :  { %v148_v41 = vmul.f32 %v228_v38, %v147_v40 }
 0x198   :  { %v149_v42 = vmul.f32 0.5, %v148_v41 }
 0x19a   :  { %v150_v43 = vsub.f32 1.5, %v149_v42 }
 0x19b   :  { %v230_v44 = vpop.eup %229 }
 0x19c   :  { %v151_v45 = vmul.f32 %v228_v38, %v150_v43  ;;  %v157_v46 = vmul.f32 %v230_v44, %v145_v39  ;;  %vm163_vm5 = vweird.f32 %v230_v44 }
 0x19d   :  { %vm164_vm7 = vmor %vm162_vm6, %vm163_vm5 }
 0x19e   :  { %v155_v48 = vsel %vm154_vm4, %v228_v38, %v151_v45  ;;  %v158_v49 = vmul.f32 %v230_v44, %v157_v46 }
 0x19f   :  { %v166_v50 = vmul.f32 %v155_v48, %v132_v25 }
 0x1a0   :  { %v159_v52 = vmul.f32 0.5, %v158_v49 }
 0x1a1   :  { %v172_v53 = vmul.f32 %v223_v47, %v166_v50 }
 0x1a2   :  { %v160_v54 = vsub.f32 1.5, %v159_v52 }
 0x1a3   :  { %v178_v55 = vadd.f32 %v224_v51, %v172_v53 }
 0x1a4   :  { %v161_v56 = vmul.f32 %v230_v44, %v160_v54 }
 0x1a5   :  { %180 = vst.msk [vmem:[#allocation8] sm:$0xff] %vm95_vm0, %v178_v55 }
 0x1a6   :  { %v165_v57 = vsel %vm164_vm7, %v230_v44, %v161_v56 }
 0x1a7   :  { %v167_v58 = vmul.f32 %v165_v57, %v133_v30 }
 0x1a9   :  { %v173_v59 = vmul.f32 %v223_v47, %v167_v58 }
 0x1ab   :  { %v179_v60 = vadd.f32 %v224_v51, %v173_v59 }
 0x1ad   :  { %181 = vst.msk [vmem:[#allocation8 + $0x8] sm:$0xff] %vm95_vm0, %v179_v60 }
 0x1ae   :  { %194 = dma.vmem_to_hbm [thread:$0]  %s187_s18, 256, %s189_s21, [#allocation4], %s334_s29, %s334_s29, %s335_s30  }
 0x1af   :  { %331 = dma.done.wait [#allocation4], 256  }
 0x1b0   :  { %332 = vsyncadd [#allocation4], 4294967040 }
 0x1b1   :  { %199 = vsyncpa [#allocation3], 1 }
 0x1b2   :  { %200 = vsyncpa [#allocation6], 1 }
 0x1b3   :  { %201 = vsyncpa [#allocation4], 1 }

</bundles_post_ra>
